<compile_context>
chip_gen: v7x
topology: tpu7x:2x2x1
jax: 0.10.0
libtpu: 0.0.40
codegen_flags: <defaults>
</compile_context>

<pallas_src>
import jax
import jax.numpy as jnp
import numpy as np
from jax.experimental import pallas as pl
from jax.experimental.pallas import tpu as pltpu


def _round_up(x, m):
    return ((x + m - 1) // m) * m


def _qnet_conv_matmul_kernel(pt_ref, w_ref, o_ref):
    # pt_ref: (1, K_pad, TM)  im2col patches (K on sublanes, M on lanes);
    #                         row K of the padding is a constant-1 "bias" row.
    # w_ref : (Cout, K_pad)   conv weight with BN scale folded in; column K
    #                         holds the folded BN bias.
    # o_ref : (1, Cout, TM)   lane-dense output tile.
    acc = jnp.dot(w_ref[...], pt_ref[0],
                  preferred_element_type=jnp.float32)        # (Cout, TM) f32
    o_ref[0] = jnp.maximum(acc, 0.0).astype(o_ref.dtype)     # ReLU (BN folded)


def qnet_conv2d(x_nchw, w_oihw, gamma, beta, running_mean, running_var,
                *, stride=1, eps=1e-5, compute_dtype=jnp.bfloat16):
    """Conv2d(bias=False, VALID) -> BatchNorm2d(eval) -> ReLU, NCHW in/out.

    compute_dtype=bfloat16 (default) halves HBM traffic for the im2col slab
    and doubles MXU rate; accumulation is f32. Use float32 for bit-tight
    comparisons (widen tolerances for bf16).
    """
    N, Cin, H, W = x_nchw.shape
    Cout, _, KH, KW = w_oihw.shape
    Ho = (H - KH) // stride + 1
    Wo = (W - KW) // stride + 1
    K = KH * KW * Cin
    Mn = Ho * Wo                                   # per-sample flattened spatial

    out_dtype = x_nchw.dtype
    in_bytes = jnp.dtype(compute_dtype).itemsize
    out_bytes = jnp.dtype(out_dtype).itemsize

    # K padding: multiple of 16 for bf16 (sublane packing), 8 for f32; always
    # leave >= 1 spare row for the folded BN bias (constant-1 patch row).
    k_align = 16 if in_bytes == 2 else 8
    K_pad = _round_up(K + 1, k_align)

    # ---- adaptive lane tile TM from an explicit VMEM budget --------------
    # Double-buffered: 2*(patch tile) + 2*(out tile) + 2*(weight) <= budget.
    VMEM_BUDGET = 48 * 1024 * 1024                 # conservative for v7x (64 MiB phys)
    w_resident = 2 * Cout * K_pad * in_bytes
    per_lane = 2 * K_pad * in_bytes + 2 * Cout * out_bytes
    tm_budget = max(128, (VMEM_BUDGET - w_resident) // per_lane)
    TM = min(4096, _round_up(Mn, 128), (tm_budget // 128) * 128)
    TM = max(TM, 128)
    M_pad = _round_up(Mn, TM)
    grid_m = M_pad // TM
    # Keep >= 2 total grid steps so both v7x TensorCores get work.
    if N * grid_m < 2 and Mn > 128:
        TM = max(128, ((TM // 2) // 128) * 128)
        M_pad = _round_up(Mn, TM)
        grid_m = M_pad // TM

    # ---- K-major im2col (bf16 cast BEFORE slicing; no slab transpose) -----
    x = x_nchw.astype(compute_dtype)               # (N, Cin, H, W)
    cols = []
    for kh in range(KH):
        for kw in range(KW):
            cols.append(jax.lax.slice(
                x,
                (0, 0, kh, kw),
                (N, Cin, kh + (Ho - 1) * stride + 1, kw + (Wo - 1) * stride + 1),
                (1, 1, stride, stride)))           # (N, Cin, Ho, Wo)
    patches = jnp.stack(cols, axis=1)              # (N, KH*KW, Cin, Ho, Wo)
    patches = patches.reshape(N, K, Mn)            # K order = (kh, kw, cin)

    patches = jnp.pad(patches, ((0, 0), (0, 0), (0, M_pad - Mn)))
    ones_row = jnp.ones((N, 1, M_pad), compute_dtype)          # bias row
    zero_rows = jnp.zeros((N, K_pad - K - 1, M_pad), compute_dtype)
    patches = jnp.concatenate([patches, ones_row, zero_rows], axis=1)  # (N,K_pad,M_pad)

    # ---- fold BN (scale and bias) into the weights ------------------------
    inv_std = 1.0 / jnp.sqrt(running_var.astype(jnp.float32) + eps)
    scale = gamma.astype(jnp.float32) * inv_std                 # (Cout,)
    bias = beta.astype(jnp.float32) - running_mean.astype(jnp.float32) * scale
    w2d = jnp.transpose(w_oihw, (0, 2, 3, 1)).reshape(Cout, K)  # (kh,kw,cin) order
    w2d = w2d.astype(jnp.float32) * scale[:, None]
    w_aug = jnp.concatenate(
        [w2d, bias[:, None], jnp.zeros((Cout, K_pad - K - 1), jnp.float32)],
        axis=1).astype(compute_dtype)                           # (Cout, K_pad)

    # ---- pallas_call -------------------------------------------------------
    vmem_need = (2 * K_pad * TM * in_bytes + 2 * Cout * TM * out_bytes
                 + 2 * Cout * K_pad * in_bytes)
    vmem_limit = int(min(max(2 * vmem_need + (4 << 20), 32 << 20), 56 << 20))
    flops = 2 * N * M_pad * K_pad * Cout
    bytes_accessed = int(patches.size * in_bytes + w_aug.size * in_bytes
                         + N * Cout * M_pad * out_bytes)

    out_padded = pl.pallas_call(
        _qnet_conv_matmul_kernel,
        out_shape=jax.ShapeDtypeStruct((N, Cout, M_pad), out_dtype),
        grid=(N, grid_m),
        in_specs=[
            pl.BlockSpec((1, K_pad, TM), lambda n, m: (n, 0, m)),   # patch tile
            pl.BlockSpec((Cout, K_pad), lambda n, m: (0, 0)),       # folded weight
        ],
        out_specs=pl.BlockSpec((1, Cout, TM), lambda n, m: (n, 0, m)),
        compiler_params=pltpu.CompilerParams(
            dimension_semantics=("parallel", "parallel"),
            vmem_limit_bytes=vmem_limit),
        cost_estimate=pl.CostEstimate(flops=flops, transcendentals=0,
                                      bytes_accessed=bytes_accessed),
    )(patches, w_aug)

    # Already channel-major NCHW: slice off lane padding, metadata reshape.
    out = out_padded[:, :, :Mn].reshape(N, Cout, Ho, Wo)
    return out


if __name__ == "__main__":
    # Small shapes consistent with the module: in_planes=4, out_planes=8,
    # kernel_size=3, stride=1, batch=2, spatial=16.
    N, Cin, H, W = 2, 4, 16, 16
    Cout, KH, KW, stride = 8, 3, 3, 1
    eps = 1e-5

    key = jax.random.PRNGKey(0)
    kx, kw, kg, kb, km, kv = jax.random.split(key, 6)
    x = jax.random.normal(kx, (N, Cin, H, W), dtype=jnp.float32)

    fan_in = Cin * KH * KW
    bound = float(np.sqrt(1.0 / fan_in))
    w_oihw = jax.random.uniform(kw, (Cout, Cin, KH, KW),
                                minval=-bound, maxval=bound, dtype=jnp.float32)
    # Non-trivial BN parameters so the scale+bias folding is actually exercised.
    gamma = 0.5 + jax.random.uniform(kg, (Cout,), dtype=jnp.float32)
    beta = 0.1 * jax.random.normal(kb, (Cout,), dtype=jnp.float32)
    running_mean = 0.1 * jax.random.normal(km, (Cout,), dtype=jnp.float32)
    running_var = 0.5 + jax.random.uniform(kv, (Cout,), dtype=jnp.float32)

    # Pure-JAX reference (f32).
    ref = jax.lax.conv_general_dilated(
        x, w_oihw, window_strides=(stride, stride), padding="VALID",
        dimension_numbers=("NCHW", "OIHW", "NCHW"))
    scale = gamma / jnp.sqrt(running_var + eps)
    ref = ref * scale[None, :, None, None] \
        + (beta - running_mean * scale)[None, :, None, None]
    ref = jnp.maximum(ref, 0.0)

    # f32 path: tight correctness check.
    out_f32 = qnet_conv2d(x, w_oihw, gamma, beta, running_mean, running_var,
                          stride=stride, eps=eps, compute_dtype=jnp.float32)
    # bf16 path (default, the performance configuration): widened tolerance.
    out_bf16 = qnet_conv2d(x, w_oihw, gamma, beta, running_mean, running_var,
                           stride=stride, eps=eps)
    out_f32, out_bf16 = jax.block_until_ready((out_f32, out_bf16))

    if not np.allclose(np.asarray(out_f32), np.asarray(ref),
                       atol=1e-4, rtol=1e-4):
        raise AssertionError("Pallas QNetConv2d (f32) mismatch vs reference")
    if not np.allclose(np.asarray(out_bf16), np.asarray(ref),
                       atol=5e-2, rtol=5e-2):
        raise AssertionError("Pallas QNetConv2d (bf16) mismatch vs reference")
    print("KERNEL_OK")
</pallas_src>

<mosaic_0001>
module attributes {stable_mosaic.version = 11 : i64} {
  func.func @_qnet_conv_matmul_kernel(%arg0: i32, %arg1: i32, %arg2: memref<1x40x256xf32, #tpu.memory_space<vmem>>, %arg3: memref<8x40xf32, #tpu.memory_space<vmem>>, %arg4: memref<1x8x256xf32, #tpu.memory_space<vmem>>) attributes {dimension_semantics = [#tpu.dimension_semantics<parallel>, #tpu.dimension_semantics<parallel>], iteration_bounds = array<i64: 2, 1>, scalar_prefetch = 0 : i64, scratch_operands = 0 : i64, tpu.core_type = #tpu.core_type<tc>, window_params = [{transform_indices = @transform_0, window_bounds = array<i64: 1, 40, 256>}, {pipeline_mode = #tpu.pipeline_mode<synchronous>, transform_indices = @transform_1, window_bounds = array<i64: 8, 40>}, {transform_indices = @transform_2, window_bounds = array<i64: 1, 8, 256>}]} {
    %c0 = arith.constant 0 : index
    %c0_0 = arith.constant 0 : index
    %0 = vector.load %arg3[%c0, %c0_0] : memref<8x40xf32, #tpu.memory_space<vmem>>, vector<8x40xf32>
    %c0_1 = arith.constant 0 : index
    %c0_2 = arith.constant 0 : index
    %c0_3 = arith.constant 0 : index
    %1 = vector.load %arg2[%c0_1, %c0_2, %c0_3] : memref<1x40x256xf32, #tpu.memory_space<vmem>>, vector<1x40x256xf32>
    %2 = vector.shape_cast %1 : vector<1x40x256xf32> to vector<40x256xf32>
    %cst = arith.constant dense<0.000000e+00> : vector<8x256xf32>
    %3 = tpu.matmul %0, %2, %cst {dimension_numbers = #tpu.dot_dimension_numbers<[1], [0], [0], [1], [0, 0, 1, 1], [], []>} : vector<8x40xf32>, vector<40x256xf32>, vector<8x256xf32> -> vector<8x256xf32>
    %cst_4 = arith.constant 0.000000e+00 : f32
    %4 = vector.broadcast %cst_4 : f32 to vector<8x256xf32>
    %5 = arith.maximumf %3, %4 : vector<8x256xf32>
    %c0_5 = arith.constant 0 : index
    %c0_6 = arith.constant 0 : index
    %c0_7 = arith.constant 0 : index
    %6 = vector.load %arg4[%c0_5, %c0_6, %c0_7] : memref<1x8x256xf32, #tpu.memory_space<vmem>>, vector<1x8x256xf32>
    %7 = vector.shape_cast %6 : vector<1x8x256xf32> to vector<8x256xf32>
    %8 = vector.shape_cast %5 : vector<8x256xf32> to vector<1x8x256xf32>
    tpu.vector_store %arg4[%c0_5, %c0_6, %c0_7], %8 {strides = array<i32>} : memref<1x8x256xf32, #tpu.memory_space<vmem>>, vector<1x8x256xf32>,
    return
  }
  func.func @transform_0(%arg0: i32, %arg1: i32) -> (i32, i32, i32) {
    %c0_i32 = arith.constant 0 : i32
    %c0_i32_0 = arith.constant 0 : i32
    return %arg0, %c0_i32, %arg1 : i32, i32, i32
  }
  func.func @transform_1(%arg0: i32, %arg1: i32) -> (i32, i32) {
    %c0_i32 = arith.constant 0 : i32
    %c0_i32_0 = arith.constant 0 : i32
    %c0_i32_1 = arith.constant 0 : i32
    return %c0_i32, %c0_i32_0 : i32, i32
  }
  func.func @transform_2(%arg0: i32, %arg1: i32) -> (i32, i32, i32) {
    %c0_i32 = arith.constant 0 : i32
    %c0_i32_0 = arith.constant 0 : i32
    return %arg0, %c0_i32, %arg1 : i32, i32, i32
  }
}

</mosaic_0001>

<bundles_post_ra>
// kernel: tpu_custom_call.1
= control target key start
LH: loop header
LB: loop body
LE: loop exit
PB: predicated region body
PF: predicated region fallthrough
CT: control target
= control target key end

     0   :  { %7 = vsyncpa [#allocation3], 0  ;;  %s886_s0 = inlined_call_operand.hbm [shape: f32[2,40,256], index: 0, kind: input, shape index: {}]   ;;  %s887_s1 = inlined_call_operand.hbm [shape: f32[8,40], index: 1, kind: input, shape index: {}]   ;;  %s888_s2 = inlined_call_operand.hbm [shape: f32[2,8,256], index: 2, kind: output, shape index: {}]  }
   0x1   :  { %9 = vsyncpa [#allocation3 + $0x1], 0 }
   0x2   :  { %10 = vsyncpa [#allocation6], 0 }
   0x3   :  { %11 = vsyncpa [#allocation4], 0 }
   0x4   :  { %13 = vsyncpa [#allocation4 + $0x1], 0  ;;  %s666_s9 = smov 0   ;;  %s668_s10 = smov 0  }
   0x5   :  { %s670_s11 = smov 0   ;;  %s672_s12 = smov 0  }
   0x6   :  { %s674_s13 = smov 0   ;;  %s676_s14 = smov 0  }
   0x7 LB: > { %s396_s15 = sadd.s32 4294967295, %s643_s14   ;;  %s397_s16 = sadd.s32 4294967294, %s643_s14   ;;  %s643_s14 = sphi %s676_s14, %s19_s14   ;;  %s639_s13 = sphi %s674_s13, %s916_s13   ;;  %s635_s12 = sphi %s672_s12, %s915_s12   ;;  %s631_s11 = sphi %s670_s11, %s914_s11   ;;  %s627_s10 = sphi %s668_s10, %s913_s10   ;;  %s623_s9 = sphi %s666_s9, %s912_s9  }
   0x8   : > { %s40_s17 = sadd.s32 1, %s631_s11  ;;  %p47_p0 = scmp.ne.s32.totalorder %s631_s11, %s627_s10 }
   0x9   : > { %p48_p1 = scmp.eq.s32.totalorder %s643_s14, 0  ;;  %p53_p2 = scmp.ne.s32.totalorder %s627_s10, %s623_s9 }
   0xa   : > { %p704_p3 = scmp.eq.s32.totalorder %s396_s15, 0  ;;  %p100_p4 = scmp.eq.s32.totalorder %s396_s15, 1 }
   0xb   : > { %p708_p5 = por %p48_p1, %p47_p0  ;;  %p106_p6 = scmp.eq.s32.totalorder %s397_s16, 1 }
   0xc   : > { %s895_s18 = scalar_select %p704_p3, 1, 0 }
   0xd   : > { %p714_p7 = por %p704_p3, %p53_p2  ;;  %p718_p8 = por %p100_p4, %p47_p0 }
   0xe   : > { %p722_p9 = por %p106_p6, %p53_p2  ;;  %p398_p10 = scmp.ge.s32.totalorder %s643_s14, 1 }
   0xf   : > { %s897_s20 = scalar_select %p714_p7, 1, 0 }
  0x10   : > { %s898_s21 = scalar_select %p718_p8, 1, 0 }
  0x11   : > { %s899_s22 = scalar_select %p722_p9, 1, 0 }
  0x12   : > { %p113_p11 = scmp.lt.s32.totalorder %s643_s14, 3  ;;  %s645_s24 = smov [#allocation5]  }
  0x13   : > { %s126_s25 = sshll.u32 %s645_s24, 4  ;;  %p444_p1 = scmp.lt.s32.totalorder %s643_s14, 2  ;;  %s127_s25 = int_to_ptr.vmem [resolvable:$true] %s126_s25 }
  0x14   : > { %p729_p13 = pnand %p398_p10, %p113_p11  ;;  %s31_s28 = sadd.s32 1, %s639_s13 }
  0x15   : > { %p738_p4 = pnand %p444_p1, %p708_p5  ;;  %p749_p6 = scmp.ge.s32.totalorder %s31_s28, 2 }
  0x16   : > { %s900_s23 = scalar_select %p729_p13, 1, 0 }
  0x17   : > { %p431_p0 = pneg %p729_p13  ;;  %s137_s30 = sand.u32 1, %s631_s11  }
  0x18   : > { %s901_s26 = scalar_select %p738_p4, 1, 0 }
  0x19   : > { %p744_p2 = pnand %p431_p0, %p704_p3  ;;  %s499_s5 = scalar_lea.hbm %s887_s1, 128 }
  0x1a   : > { %s903_s29 = scalar_select %p749_p6, 1, 0 }
  0x1b   : > { %p500_p5 = scmp.ne.s32.totalorder %s887_s1, %s499_s5  ;;  %p501_p10 = pneg %p744_p2 }
  0x1c   : > { %p506_p0 = scmp.lt.u32.totalorder %s499_s5, %s887_s1 }
  0x1d   : > { %p502_p11 = pnand %p501_p10, %p500_p5 }
  0x1f   : > { %p503_p1 = pneg %p502_p11 }
  0x21   : > { %p508_p12 = pnand %p506_p0, %p503_p1 }
  0x23   : > { %511 = shalt.err (!%p508_p12)
}
  0x24   : > { %s512_s16 = scalar_lea.vmem %s127_s25, 128  ;;  %p520_p7 = scmp.lt.s32.totalorder %s127_s25, %s127_s25 }
  0x25   : > { %p513_p9 = scmp.ne.s32.totalorder %s127_s25, %s512_s16  ;;  %p521_p13 = scmp.lt.s32.totalorder %s512_s16, %s512_s16 }
  0x27   : > { %p515_p8 = pnand %p513_p9, %p501_p10  ;;  %p522_p4 = por %p521_p13, %p520_p7 }
  0x29   : > { %p516_p3 = pneg %p515_p8 }
  0x2b   : > { %p523_p6 = pnand %p522_p4, %p516_p3 }
  0x2d   : > { %526 = shalt.err (!%p523_p6)
}
  0x2e   : > { %434 = dma.hbm_to_vmem [thread:$0]  (!%p744_p2), %s887_s1, 128, %s127_s25, [#allocation6]  }
  0x2f   : > { %p904_p9 = scmp.ne.s32.totalorder %s903_s29, 0  ;;  %s420_s3 = smul.u32 80, %s137_s30 }
  0x30   : > { %s421_s5 = smul.u32 1280, %s639_s13  ;;  %s789_s29 = scalar_lea.sflag [#allocation3], %s137_s30 }
  0x31   : > { %s918_s28 = smov (%p904_p9, %s31_s28), 0  ;;  %s141_s8 = scalar_lea.vmem [#allocation2], %s420_s3 }
  0x32   : > { %s35_s4 = ssub.s32 %s639_s13, %s918_s28  ;;  %s780_s7 = scalar_lea.hbm %s886_s0, %s421_s5 }
  0x33   : > { %p38_p3 = scmp.eq.s32.totalorder %s35_s4, 0  ;;  %s150_s15 = sshll.u32 %s141_s8, 4  ;;  %s787_s15 = int_to_ptr.vmem [resolvable:$true] %s150_s15 }
  0x34   : > { %s527_s16 = scalar_lea.hbm %s780_s7, 1280  ;;  %p905_p8 = scmp.ne.s32.totalorder %s901_s26, 0 }
  0x35   : > { %s785_s25 = scalar_select %p38_p3, %s631_s11, %s40_s17  }
  0x36   : > { %p528_p7 = scmp.ne.s32.totalorder %s780_s7, %s527_s16  ;;  %p529_p12 = pneg %p905_p8 }
  0x37   : > { %s532_s3 = scalar_lea.hbm %s886_s0, 2560  ;;  %p533_p2 = scmp.lt.u32.totalorder %s780_s7, %s886_s0 }
  0x38   : > { %p530_p13 = pnand %p529_p12, %p528_p7  ;;  %p534_p6 = scmp.lt.u32.totalorder %s532_s3, %s527_s16 }
  0x39   : > { %p536_p10 = scmp.lt.u32.totalorder %s527_s16, %s780_s7 }
  0x3a   : > { %p531_p4 = pneg %p530_p13  ;;  %p535_p5 = por %p534_p6, %p533_p2 }
  0x3c   : > { %p537_p11 = por %p536_p10, %p535_p5 }
  0x3e   : > { %p538_p1 = pnand %p537_p11, %p531_p4 }
  0x40   : > { %541 = shalt.err (!%p538_p1)
}
  0x41   : > { %s542_s17 = scalar_lea.vmem %s787_s15, 1280  ;;  %s646_s30 = smov [#allocation2]  }
  0x42   : > { %p543_p0 = scmp.ne.s32.totalorder %s787_s15, %s542_s17  ;;  %s547_s27 = sshll.u32 %s646_s30, 4  ;;  %s548_s27 = int_to_ptr.vmem [resolvable:$false] %s547_s27 }
  0x43   : > { %s549_s6 = scalar_lea.vmem %s548_s27, 2560  ;;  %p550_p7 = scmp.lt.s32.totalorder %s787_s15, %s548_s27 }
  0x44   : > { %p545_p9 = pnand %p543_p0, %p529_p12  ;;  %p551_p13 = scmp.lt.s32.totalorder %s549_s6, %s542_s17 }
  0x46   : > { %p546_p3 = pneg %p545_p9  ;;  %p552_p2 = por %p551_p13, %p550_p7 }
  0x48   : > { %p553_p6 = pnand %p552_p2, %p546_p3 }
  0x4a   : > { %556 = shalt.err (!%p553_p6)
}
  0x4b   : > { %s647_s8 = smov 256   ;;  %s648_s16 = smov 16  }
  0x4c   : > { %438 = dma.hbm_to_vmem [thread:$0]  (!%p905_p8), %s780_s7, 1280, %s787_s15, %s789_s29, %s647_s8, %s647_s8, %s648_s16  }
  0x4d   : > { %p906_p12 = scmp.ne.s32.totalorder %s900_s23, 0 }
  0x4e   : > { %s820_s19 = sand.u32 (!%p906_p12), 1, %s627_s10   ;;  %p907_p4 = scmp.ne.s32.totalorder (!%p906_p12), %s897_s20, 0 }
  0x4f   : > { %162 = sbr.rel (%p906_p12) target bundleno = 332 (0x14c), region = 28  ;;  %s165_s3 = scalar_lea.sflag (!%p906_p12), [#allocation3], %s820_s19 }
  0x50   : > { %s422_s24 = smul.u32 (!%p906_p12), 80, %s820_s19 }
  0x52   : > { %s168_s4 = scalar_lea.vmem (!%p906_p12), [#allocation2], %s422_s24 }
  0x56   : > { %610 = dma.done.wait (%p907_p4), %s165_s3, 1280  }
  0x57   : > { %612 = vsyncadd (%p907_p4), %s165_s3, 4294966016  ;;  %p908_p5 = scmp.ne.s32.totalorder %s895_s18, 0 }
  0x59   : > { %614 = dma.done.wait (%p908_p5), [#allocation6], 128  }
  0x5a   : > { %616 = vsyncadd (%p908_p5), [#allocation6], 4294967168  ;;  %v649_v0 = vmov 0.0   ;;  %v197_v1 = vld [vmem:[%s168_s4 + $0x8] sm:$0xff]  ;;  %v199_v2 = vld [vmem:[%s168_s4 + $0x18] sm:$0xff]  ;;  %vm206_vm0 = vcmask 326656  }
  0x5b   : > { %274 = vmatprep.mubr.f32.mxu0 %v649_v0  ;;  %v196_v3 = vld [vmem:[%s168_s4] sm:$0xff]  ;;  %v412_v4 = vpack.c.bf16 %v199_v2, %v197_v1  ;;  %v198_v5 = vld [vmem:[%s168_s4 + $0x10] sm:$0xff]  ;;  %v201_v6 = vld [vmem:[%s168_s4 + $0x28] sm:$0xff]  ;;  %s404_s18 = sshll.u32 %s820_s19, 4  ;;  %s411_s20 = sshll.u32 %s635_s12, 8 }
  0x5c   : > { %v203_v7 = vld [vmem:[%s168_s4 + $0x38] sm:$0xff]  ;;  %v414_v8 = vpack.c.bf16 %v198_v5, %v196_v3  ;;  %v200_v10 = vld [vmem:[%s168_s4 + $0x20] sm:$0xff]  ;;  %v202_v11 = vld [vmem:[%s168_s4 + $0x30] sm:$0xff]  ;;  %s192_s23 = scalar_lea.vmem [#allocation7], %s404_s18  ;;  %s837_s29 = scalar_lea.hbm %s888_s2, %s411_s20 }
  0x5d   : > { %v416_v9 = vpack.c.bf16 %v203_v7, %v201_v6  ;;  %413 = vmatprep.subr.bf16.mxu0 %v412_v4  ;;  %v418_v12 = vpack.c.bf16 %v202_v11, %v200_v10  ;;  %v205_v13 = vld [vmem:[%s168_s4 + $0x48] sm:$0xff]  ;;  %v204_v14 = vld [vmem:[%s168_s4 + $0x40] sm:$0xff]  ;;  %s302_s26 = sshll.u32 %s192_s23, 4  ;;  %s286_s5 = scalar_lea.sflag [#allocation4], %s820_s19  ;;  %s839_s26 = int_to_ptr.vmem [resolvable:$true] %s302_s26 }
  0x5e   : > { %415 = vmatpush1.bf16.msra.mxu0 %v414_v8  ;;  %v195_v15 = vld [vmem:[#allocation5] sm:$0xff]  ;;  %s557_s12 = scalar_lea.vmem %s839_s26, 256  ;;  %p909_p10 = scmp.ne.s32.totalorder %s898_s21, 0 }
  0x5f   : > { %417 = vmatprep.subr.bf16.mxu0 %v416_v9  ;;  %p558_p8 = scmp.ne.s32.totalorder %s839_s26, %s557_s12  ;;  %s650_s17 = smov [#allocation7]  }
  0x60   : > { %s561_s30 = sshll.u32 %s650_s17, 4  ;;  %s562_s30 = int_to_ptr.vmem [resolvable:$false] %s561_s30 }
  0x61   : > { %p559_p11 = pnand %p558_p8, %p909_p10  ;;  %s563_s27 = scalar_lea.vmem %s562_s30, 512 }
  0x62   : > { %419 = vmatpush1.bf16.msra.mxu0 %v418_v12  ;;  %p564_p0 = scmp.lt.s32.totalorder %s839_s26, %s562_s30  ;;  %p565_p9 = scmp.lt.s32.totalorder %s563_s27, %s557_s12 }
  0x63   : > { %218 = vmatprep.subr.mxu0 %v205_v13  ;;  %p560_p1 = pneg %p559_p11 }
  0x64   : > { %p566_p3 = por %p565_p9, %p564_p0 }
  0x66   : > { %219 = vmatpush1.msra.mxu0 %v204_v14  ;;  %p567_p7 = pnand %p566_p3, %p560_p1 }
  0x67   : > { %405 = vmatmul.mubr.msk.f32.vlgmr.msra.gmra.mrb[0].mxu0 %vm206_vm0, %v195_v15 }
 0x13a   : > { %v276_v16 = vpop.f32.mrb[0].mxu0 }
 0x13b   : > { %v281_v17 = vmax.f32 %v276_v16, 0.0  ;;  %v278_v18 = vpop.f32.mrb[1].mxu0 }
 0x13c   : > { %v282_v19 = vmax.f32 %v278_v18, 0.0 }
 0x13d   : > { %283 = vst [vmem:[%s192_s23] sm:$0xff] %v281_v17 }
 0x13e   : > { %284 = vst [vmem:[%s192_s23 + $0x8] sm:$0xff] %v282_v19 }
 0x13f   : > { %570 = shalt.err (!%p567_p7)
}
 0x140   : > { %s571_s6 = scalar_lea.hbm %s837_s29, 256  ;;  %s575_s19 = scalar_lea.hbm %s888_s2, 512 }
 0x141   : > { %p572_p13 = scmp.ne.s32.totalorder %s837_s29, %s571_s6  ;;  %p576_p12 = scmp.lt.u32.totalorder %s837_s29, %s888_s2 }
 0x142   : > { %p577_p4 = scmp.lt.u32.totalorder %s575_s19, %s571_s6  ;;  %p579_p8 = scmp.lt.u32.totalorder %s571_s6, %s837_s29 }
 0x143   : > { %p573_p2 = pnand %p572_p13, %p909_p10 }
 0x144   : > { %p578_p5 = por %p577_p4, %p576_p12 }
 0x145   : > { %p574_p6 = pneg %p573_p2 }
 0x146   : > { %p580_p11 = por %p579_p8, %p578_p5 }
 0x148   : > { %p581_p1 = pnand %p580_p11, %p574_p6 }
 0x14a   : > { %584 = shalt.err (!%p581_p1)
}
 0x14b   : > { %429 = dma.vmem_to_hbm [thread:$0]  (%p909_p10), %s839_s26, 256, %s837_s29, %s286_s5  }
 0x14c PF: > { %s314_s4 = sand.u32 1, %s623_s9   ;;  %p910_p0 = scmp.ne.s32.totalorder %s899_s22, 0 }
 0x14d   : > { %p911_p9 = scmp.ge.s32.totalorder %s643_s14, 2  ;;  %s315_s18 = scalar_lea.sflag [#allocation4], %s314_s4 }
 0x14f   : > { %p440_p3 = pnand %p911_p9, %p910_p0 }
 0x151   : > { %618 = dma.done.wait (!%p440_p3), %s315_s18, 256  }
 0x152   : > { %620 = vsyncadd (!%p440_p3), %s315_s18, 4294967040  ;;  %s19_s14 = sadd.s32 1, %s643_s14   ;;  %s912_s9 = smov %s627_s10 }
 0x153   : > { %p16_p7 = scmp.ge.s32.totalorder %s19_s14, 4   ;;  %s913_s10 = smov %s631_s11 }
 0x154   : > { %s914_s11 = smov %s785_s25  ;;  %s915_s12 = smov %s639_s13 }
 0x155   : > { %s916_s13 = smov %s918_s28  ;;  %18 = sbr.rel (!%p16_p7) target bundleno = 7 (0x7), region = 77 }
 0x15c   :  { %320 = vsyncpa [#allocation3], 1 }
 0x15d   :  { %322 = vsyncpa [#allocation3 + $0x1], 1 }
 0x15e   :  { %323 = vsyncpa [#allocation6], 1 }
 0x15f   :  { %324 = vsyncpa [#allocation4], 1 }
 0x160   :  { %326 = vsyncpa [#allocation4 + $0x1], 1 }

</bundles_post_ra>
